<compile_context>
chip_gen: v6e
topology: v6e:2x2x1
jax: 0.10.0
libtpu: 0.0.40
codegen_flags: <defaults>
</compile_context>

<pallas_src>
import functools

import numpy as np
import jax
import jax.numpy as jnp
from jax.experimental import pallas as pl
from jax.experimental.pallas import tpu as pltpu


# ----------------------------------------------------------------------------
# Config (small, consistent with the module's forward)
# ----------------------------------------------------------------------------
B = 2                  # batch
C = 32                 # args.img_hidden_sz (channel dim of global feature)
HID = 32               # args.hidden_sz
H = W = 16             # spatial size of global feature map
GLOBAL_EMBEDS = 4      # args.global_image_embeds -> AdaptiveAvgPool2d((2, 2))
R = 8                  # number of region features
POOL_TYPE = "avg"      # args.img_embed_pool_type


def _pool_output_shape(num_embeds):
    if num_embeds in [1, 2, 3, 5, 7]:
        return (num_embeds, 1)
    return {4: (2, 2), 6: (3, 2), 8: (4, 2), 9: (3, 3),
            16: (4, 4), 25: (5, 5), 36: (6, 6)}[num_embeds]


def _adaptive_avg_pool_matrix(h, w, gh, gw):
    """(gh*gw, h*w) matrix M with M @ x(HW) == AdaptiveAvgPool2d((gh,gw)) per channel."""
    m = np.zeros((gh * gw, h * w), dtype=np.float32)
    for i in range(gh):
        hs, he = (i * h) // gh, -(-((i + 1) * h) // gh)
        for j in range(gw):
            ws, we = (j * w) // gw, -(-((j + 1) * w) // gw)
            idx = [hh * w + ww for hh in range(hs, he) for ww in range(ws, we)]
            m[i * gw + j, idx] = 1.0 / len(idx)
    return m


@functools.lru_cache(maxsize=None)
def _block_diag_pool_matrix(b, h, w, gh, gw):
    """(B*P, B*HW) block-diagonal pool matrix.

    Against the (B*HW, C)-layout (NHWC-flattened) global feature, one canonical
    MXU matmul produces the pooled feature already in (B*P, C) row orientation —
    no transposed-LHS contraction and no per-batch XLU transposes in the kernel.
    Built once per shape (lru_cache) and constant-folded under jit.
    """
    base = _adaptive_avg_pool_matrix(h, w, gh, gw)        # (P, HW)
    p, hw = base.shape
    bd = np.zeros((b * p, b * hw), dtype=np.float32)
    for bi in range(b):
        bd[bi * p:(bi + 1) * p, bi * hw:(bi + 1) * hw] = base
    return bd


# ----------------------------------------------------------------------------
# Pallas kernel: fused pool + single packed Linear + contiguous row-range stores
# ----------------------------------------------------------------------------
def _make_kernel(b, p, r):
    def kernel(x_ref, reg_ref, bd_ref, w_ref, bias_ref, out_ref, lhs_ref):
        # x_ref:    (B*HW, C)     global feature, NHWC-flattened
        # reg_ref:  (B*R, C)      region features, batch-flattened
        # bd_ref:   (B*P, B*HW)   block-diagonal adaptive-avg-pool matrix
        # w_ref:    (C, 2*HID)    [Wg | Wr] packed column-wise
        # bias_ref: (1, 2*HID)    [bg | br]
        # out_ref:  (B*(P+R), HID)
        # lhs_ref:  (B*(P+R), C)  VMEM scratch: stacked [pooled ; region] rows
        hid = out_ref.shape[1]
        bp = b * p

        # Stage 1: pool every batch's global rows in ONE canonical MXU call.
        pooled = jnp.dot(bd_ref[...], x_ref[...],
                         preferred_element_type=jnp.float32)            # (B*P, C)

        # Stack pooled + region rows into one LHS tile (sublane-aligned offsets).
        lhs_ref[:bp, :] = pooled
        lhs_ref[bp:, :] = reg_ref[...]

        # Stage 2: ONE fused MXU call against [Wg | Wr]; bias added once as a
        # broadcast (1, 2*HID) row — no sublane slicing of the bias tile.
        res = jnp.dot(lhs_ref[...], w_ref[...],
                      preferred_element_type=jnp.float32) + bias_ref[...]  # (B*(P+R), 2*HID)

        # Epilogue: contiguous pl.ds row-range stores into the flat 2-D output,
        # picking the Wg half for global rows and the Wr half for region rows.
        for bi in range(b):                          # static unroll; b is tiny
            o = bi * (p + r)
            out_ref[pl.ds(o, p), :] = res[bi * p:(bi + 1) * p, :hid]
            out_ref[pl.ds(o + p, r), :] = res[bp + bi * r:bp + (bi + 1) * r, hid:]

    return kernel


def pack_params(params):
    """One-time packing at parameter-init time (NOT per forward call)."""
    w_packed = jnp.concatenate([params["wg"], params["wr"]], axis=1)   # (C, 2*HID)
    b_packed = jnp.concatenate([params["bg"], params["br"]], axis=1)   # (1, 2*HID)
    return w_packed, b_packed


@jax.jit
def mix_image_encoder(global_feature, region_feature, w_packed, b_packed):
    """global_feature: (B, C, H, W) NCHW; region_feature: (B, R, C)."""
    if POOL_TYPE != "avg":
        # TODO(synk): 'max' pool variant (AdaptiveMaxPool2d) is not a matmul;
        # only the default 'avg' path is implemented in-kernel.
        raise NotImplementedError("only img_embed_pool_type='avg' is implemented")

    b, c, h, w = global_feature.shape
    _, r, _ = region_feature.shape
    gh, gw = _pool_output_shape(GLOBAL_EMBEDS)
    p = gh * gw
    hw = h * w
    hid = w_packed.shape[1] // 2
    rows = b * (p + r)

    # (B*HW, C) NHWC-flat layout so the in-kernel pool matmul yields (B*P, C)
    # directly (review item 2: no transposed-LHS dot_general).
    x_nhwc = jnp.transpose(global_feature, (0, 2, 3, 1)).reshape(b * hw, c)
    reg2d = region_feature.reshape(b * r, c)                    # free reshape

    # Constant (cached numpy); folds into the executable under jit.
    bd_pool = jnp.asarray(_block_diag_pool_matrix(b, h, w, gh, gw))    # (B*P, B*HW)

    itemsize = 4
    cost = pl.CostEstimate(
        flops=2 * (b * p * b * hw * c + rows * c * 2 * hid),
        transcendentals=0,
        bytes_accessed=itemsize * (x_nhwc.size + reg2d.size + bd_pool.size
                                   + w_packed.size + b_packed.size + rows * hid),
    )

    out2d = pl.pallas_call(
        _make_kernel(b, p, r),
        out_shape=jax.ShapeDtypeStruct((rows, hid), jnp.float32),
        grid_spec=pltpu.PrefetchScalarGridSpec(
            num_scalar_prefetch=0,
            grid=(1,),                                        # single, latency-bound invocation
            in_specs=[
                pl.BlockSpec((b * hw, c), lambda i: (0, 0)),      # global feat (NHWC-flat)
                pl.BlockSpec((b * r, c), lambda i: (0, 0)),       # region feat
                pl.BlockSpec((b * p, b * hw), lambda i: (0, 0)),  # block-diag pool matrix
                pl.BlockSpec((c, 2 * hid), lambda i: (0, 0)),     # [Wg | Wr]
                pl.BlockSpec((1, 2 * hid), lambda i: (0, 0)),     # [bg | br]
            ],
            out_specs=pl.BlockSpec((rows, hid), lambda i: (0, 0)),
            scratch_shapes=[pltpu.VMEM((rows, c), jnp.float32)],
        ),
        compiler_params=pltpu.CompilerParams(
            dimension_semantics=("arbitrary",)),
        cost_estimate=cost,
    )(x_nhwc, reg2d, bd_pool, w_packed, b_packed)

    return out2d.reshape(b, p + r, hid)                        # free view


# ----------------------------------------------------------------------------
# Pure-JAX reference (for correctness check)
# ----------------------------------------------------------------------------
def reference(global_feature, region_feature, params):
    b, c, h, w = global_feature.shape
    gh, gw = _pool_output_shape(GLOBAL_EMBEDS)
    pool = jnp.asarray(_adaptive_avg_pool_matrix(h, w, gh, gw))       # (P, HW)
    x_flat = global_feature.reshape(b, c, h * w)
    pooled = jnp.einsum("ps,bcs->bpc", pool, x_flat)                   # (B, P, C)
    g = pooled @ params["wg"] + params["bg"]
    r = region_feature @ params["wr"] + params["br"]
    return jnp.concatenate([g, r], axis=1)


if __name__ == "__main__":
    key = jax.random.PRNGKey(0)
    k1, k2, k3, k4, k5, k6 = jax.random.split(key, 6)

    # Deterministic parameter init (shapes per nn.Linear(img_hidden_sz, hidden_sz))
    params = {
        "wg": jax.random.normal(k1, (C, HID), jnp.float32) * 0.02,
        "bg": jax.random.normal(k2, (1, HID), jnp.float32) * 0.02,
        "wr": jax.random.normal(k3, (C, HID), jnp.float32) * 0.02,
        "br": jax.random.normal(k4, (1, HID), jnp.float32) * 0.02,
    }
    w_packed, b_packed = pack_params(params)        # packed ONCE at init time

    global_feature = jax.random.normal(k5, (B, C, H, W), jnp.float32)  # NCHW
    region_feature = jax.random.normal(k6, (B, R, C), jnp.float32)

    out = mix_image_encoder(global_feature, region_feature, w_packed, b_packed)
    out = jax.block_until_ready(out)

    ref = reference(global_feature, region_feature, params)
    assert out.shape == (B, GLOBAL_EMBEDS + R, HID), out.shape
    assert jnp.allclose(out, ref, atol=1e-5, rtol=1e-5), "mismatch vs reference"

    print("KERNEL_OK")
</pallas_src>

<mosaic_0001>
module attributes {stable_mosaic.version = 11 : i64} {
  func.func @kernel(%arg0: i32, %arg1: memref<512x32xf32, #tpu.memory_space<vmem>>, %arg2: memref<16x32xf32, #tpu.memory_space<vmem>>, %arg3: memref<8x512xf32, #tpu.memory_space<vmem>>, %arg4: memref<32x64xf32, #tpu.memory_space<vmem>>, %arg5: memref<1x64xf32, #tpu.memory_space<vmem>>, %arg6: memref<24x32xf32, #tpu.memory_space<vmem>>, %arg7: memref<24x32xf32, #tpu.memory_space<vmem>>) attributes {dimension_semantics = [#tpu.dimension_semantics<arbitrary>], iteration_bounds = array<i64: 1>, scalar_prefetch = 0 : i64, scratch_operands = 1 : i64, tpu.core_type = #tpu.core_type<tc>, window_params = [{pipeline_mode = #tpu.pipeline_mode<synchronous>, transform_indices = @transform_0, window_bounds = array<i64: 512, 32>}, {pipeline_mode = #tpu.pipeline_mode<synchronous>, transform_indices = @transform_1, window_bounds = array<i64: 16, 32>}, {pipeline_mode = #tpu.pipeline_mode<synchronous>, transform_indices = @transform_2, window_bounds = array<i64: 8, 512>}, {pipeline_mode = #tpu.pipeline_mode<synchronous>, transform_indices = @transform_3, window_bounds = array<i64: 32, 64>}, {pipeline_mode = #tpu.pipeline_mode<synchronous>, transform_indices = @transform_4, window_bounds = array<i64: 1, 64>}, {pipeline_mode = #tpu.pipeline_mode<synchronous>, transform_indices = @transform_5, window_bounds = array<i64: 24, 32>}]} {
    %c0 = arith.constant 0 : index
    %c0_0 = arith.constant 0 : index
    %0 = vector.load %arg3[%c0, %c0_0] : memref<8x512xf32, #tpu.memory_space<vmem>>, vector<8x512xf32>
    %c0_1 = arith.constant 0 : index
    %c0_2 = arith.constant 0 : index
    %1 = vector.load %arg1[%c0_1, %c0_2] : memref<512x32xf32, #tpu.memory_space<vmem>>, vector<512x32xf32>
    %cst = arith.constant dense<0.000000e+00> : vector<8x32xf32>
    %2 = tpu.matmul %0, %1, %cst {dimension_numbers = #tpu.dot_dimension_numbers<[1], [0], [0], [1], [0, 0, 1, 1], [], []>} : vector<8x512xf32>, vector<512x32xf32>, vector<8x32xf32> -> vector<8x32xf32>
    %c0_3 = arith.constant 0 : index
    %c0_4 = arith.constant 0 : index
    %3 = vector.load %arg7[%c0_3, %c0_4] : memref<24x32xf32, #tpu.memory_space<vmem>>, vector<8x32xf32>
    tpu.vector_store %arg7[%c0_3, %c0_4], %2 {strides = array<i32>} : memref<24x32xf32, #tpu.memory_space<vmem>>, vector<8x32xf32>,
    %c0_5 = arith.constant 0 : index
    %c0_6 = arith.constant 0 : index
    %4 = vector.load %arg2[%c0_5, %c0_6] : memref<16x32xf32, #tpu.memory_space<vmem>>, vector<16x32xf32>
    %c8 = arith.constant 8 : index
    %c0_7 = arith.constant 0 : index
    %5 = vector.load %arg7[%c8, %c0_7] : memref<24x32xf32, #tpu.memory_space<vmem>>, vector<16x32xf32>
    tpu.vector_store %arg7[%c8, %c0_7], %4 {strides = array<i32>} : memref<24x32xf32, #tpu.memory_space<vmem>>, vector<16x32xf32>,
    %c0_8 = arith.constant 0 : index
    %c0_9 = arith.constant 0 : index
    %6 = vector.load %arg7[%c0_8, %c0_9] : memref<24x32xf32, #tpu.memory_space<vmem>>, vector<24x32xf32>
    %c0_10 = arith.constant 0 : index
    %c0_11 = arith.constant 0 : index
    %7 = vector.load %arg4[%c0_10, %c0_11] : memref<32x64xf32, #tpu.memory_space<vmem>>, vector<32x64xf32>
    %cst_12 = arith.constant dense<0.000000e+00> : vector<24x64xf32>
    %8 = tpu.matmul %6, %7, %cst_12 {dimension_numbers = #tpu.dot_dimension_numbers<[1], [0], [0], [1], [0, 0, 1, 1], [], []>} : vector<24x32xf32>, vector<32x64xf32>, vector<24x64xf32> -> vector<24x64xf32>
    %c0_13 = arith.constant 0 : index
    %c0_14 = arith.constant 0 : index
    %9 = vector.load %arg5[%c0_13, %c0_14] : memref<1x64xf32, #tpu.memory_space<vmem>>, vector<1x64xf32>
    %10 = vector.broadcast %9 : vector<1x64xf32> to vector<24x64xf32>
    %11 = arith.addf %8, %10 : vector<24x64xf32>
    %12 = vector.extract_strided_slice %11 {offsets = [0, 0], sizes = [4, 32], strides = [1, 1]} : vector<24x64xf32> to vector<4x32xf32>
    %c0_15 = arith.constant 0 : index
    %c0_16 = arith.constant 0 : index
    %13 = vector.load %arg6[%c0_15, %c0_16] : memref<24x32xf32, #tpu.memory_space<vmem>>, vector<4x32xf32>
    tpu.vector_store %arg6[%c0_15, %c0_16], %12 {strides = array<i32>} : memref<24x32xf32, #tpu.memory_space<vmem>>, vector<4x32xf32>,
    %14 = vector.extract_strided_slice %11 {offsets = [8, 32], sizes = [8, 32], strides = [1, 1]} : vector<24x64xf32> to vector<8x32xf32>
    %c4 = arith.constant 4 : index
    %c0_17 = arith.constant 0 : index
    %15 = vector.load %arg6[%c4, %c0_17] : memref<24x32xf32, #tpu.memory_space<vmem>>, vector<8x32xf32>
    tpu.vector_store %arg6[%c4, %c0_17], %14 {strides = array<i32>} : memref<24x32xf32, #tpu.memory_space<vmem>>, vector<8x32xf32>,
    %16 = vector.extract_strided_slice %11 {offsets = [4, 0], sizes = [4, 32], strides = [1, 1]} : vector<24x64xf32> to vector<4x32xf32>
    %c12 = arith.constant 12 : index
    %c0_18 = arith.constant 0 : index
    %17 = vector.load %arg6[%c12, %c0_18] : memref<24x32xf32, #tpu.memory_space<vmem>>, vector<4x32xf32>
    tpu.vector_store %arg6[%c12, %c0_18], %16 {strides = array<i32>} : memref<24x32xf32, #tpu.memory_space<vmem>>, vector<4x32xf32>,
    %18 = vector.extract_strided_slice %11 {offsets = [16, 32], sizes = [8, 32], strides = [1, 1]} : vector<24x64xf32> to vector<8x32xf32>
    %c16 = arith.constant 16 : index
    %c0_19 = arith.constant 0 : index
    %19 = vector.load %arg6[%c16, %c0_19] : memref<24x32xf32, #tpu.memory_space<vmem>>, vector<8x32xf32>
    tpu.vector_store %arg6[%c16, %c0_19], %18 {strides = array<i32>} : memref<24x32xf32, #tpu.memory_space<vmem>>, vector<8x32xf32>,
    return
  }
  func.func @transform_0(%arg0: i32) -> (i32, i32) {
    %c0_i32 = arith.constant 0 : i32
    %c0_i32_0 = arith.constant 0 : i32
    %c0_i32_1 = arith.constant 0 : i32
    return %c0_i32, %c0_i32_0 : i32, i32
  }
  func.func @transform_1(%arg0: i32) -> (i32, i32) {
    %c0_i32 = arith.constant 0 : i32
    %c0_i32_0 = arith.constant 0 : i32
    %c0_i32_1 = arith.constant 0 : i32
    return %c0_i32, %c0_i32_0 : i32, i32
  }
  func.func @transform_2(%arg0: i32) -> (i32, i32) {
    %c0_i32 = arith.constant 0 : i32
    %c0_i32_0 = arith.constant 0 : i32
    %c0_i32_1 = arith.constant 0 : i32
    return %c0_i32, %c0_i32_0 : i32, i32
  }
  func.func @transform_3(%arg0: i32) -> (i32, i32) {
    %c0_i32 = arith.constant 0 : i32
    %c0_i32_0 = arith.constant 0 : i32
    %c0_i32_1 = arith.constant 0 : i32
    return %c0_i32, %c0_i32_0 : i32, i32
  }
  func.func @transform_4(%arg0: i32) -> (i32, i32) {
    %c0_i32 = arith.constant 0 : i32
    %c0_i32_0 = arith.constant 0 : i32
    %c0_i32_1 = arith.constant 0 : i32
    return %c0_i32, %c0_i32_0 : i32, i32
  }
  func.func @transform_5(%arg0: i32) -> (i32, i32) {
    %c0_i32 = arith.constant 0 : i32
    %c0_i32_0 = arith.constant 0 : i32
    %c0_i32_1 = arith.constant 0 : i32
    return %c0_i32, %c0_i32_0 : i32, i32
  }
}

</mosaic_0001>

<bundles_post_ra>
// kernel: mix_image_encoder.1
= control target key start
LH: loop header
LB: loop body
LE: loop exit
PB: predicated region body
PF: predicated region fallthrough
CT: control target
= control target key end

     0   :  { %10 = vsyncpa [#allocation4], 0  ;;  %s698_s0 = inlined_call_operand.hbm [shape: f32[512,32], index: 0, kind: input, shape index: {}]   ;;  %s699_s1 = inlined_call_operand.hbm [shape: f32[16,32], index: 1, kind: input, shape index: {}]   ;;  %s700_s2 = inlined_call_operand.hbm [shape: f32[8,512], index: 2, kind: input, shape index: {}]   ;;  %s701_s3 = inlined_call_operand.hbm [shape: f32[32,64], index: 3, kind: input, shape index: {}]   ;;  %s702_s4 = inlined_call_operand.vmem [shape: f32[1,64], index: 4, kind: input, shape index: {}]   ;;  %s703_s5 = inlined_call_operand.vmem [shape: f32[24,32], index: 5, kind: output, shape index: {}]  }
   0x1   :  { %11 = vsyncpa [#allocation6], 0 }
   0x2   :  { %12 = vsyncpa [#allocation9], 0  ;;  %s612_s18 = smov [#allocation5]   ;;  %s613_s20 = smov [#allocation3]  }
   0x3   :  { %s30_s19 = sshll.u32 %s612_s18, 4  ;;  %s18_s21 = sshll.u32 %s613_s20, 4  ;;  %s31_s19 = int_to_ptr.vmem [resolvable:$true] %s30_s19  ;;  %s19_s21 = int_to_ptr.vmem [resolvable:$true] %s18_s21 }
   0x4   :  { %s534_s22 = scalar_lea.vmem %s31_s19, 256  ;;  %p539_p1 = scmp.lt.s32.totalorder %s31_s19, %s31_s19 }
   0x5   :  { %p535_p0 = scmp.ne.s32.totalorder %s31_s19, %s534_s22  ;;  %p540_p2 = scmp.lt.s32.totalorder %s534_s22, %s534_s22 }
   0x7   :  { %p541_p3 = por %p540_p2, %p539_p1 }
   0x9   :  { %p542_p4 = pnand %p541_p3, %p535_p0 }
   0xb   :  { %545 = shalt.err (!%p542_p4)
}
   0xc   :  { %s614_s23 = smov 128   ;;  %s615_s24 = smov 8  }
   0xd   :  { %36 = dma.hbm_to_vmem [thread:$0]  %s699_s1, 256, %s31_s19, [#allocation6], %s614_s23, %s614_s23, %s615_s24  }
   0xe   :  { %s554_s27 = scalar_lea.vmem %s19_s21, 8192  ;;  %p559_p6 = scmp.lt.s32.totalorder %s19_s21, %s19_s21 }
   0xf   :  { %p555_p5 = scmp.ne.s32.totalorder %s19_s21, %s554_s27  ;;  %p560_p7 = scmp.lt.s32.totalorder %s554_s27, %s554_s27 }
  0x11   :  { %p561_p8 = por %p560_p7, %p559_p6 }
  0x13   :  { %p562_p9 = pnand %p561_p8, %p555_p5 }
  0x15   :  { %565 = shalt.err (!%p562_p9)
}
  0x16   :  { %24 = dma.hbm_to_vmem [thread:$0]  %s698_s0, 8192, %s19_s21, [#allocation4], %s614_s23, %s614_s23, %s615_s24  }
  0x17   :  { %s616_s30 = smov [#allocation7]   ;;  %s617_s7 = smov [#allocation8]  }
  0x18   :  { %s43_s6 = sshll.u32 %s616_s30, 4  ;;  %s52_s8 = sshll.u32 %s617_s7, 4  ;;  %s44_s6 = int_to_ptr.vmem [resolvable:$true] %s43_s6  ;;  %s53_s8 = int_to_ptr.vmem [resolvable:$true] %s52_s8 }
  0x19   :  { %s574_s1 = scalar_lea.vmem %s44_s6, 512  ;;  %p579_p11 = scmp.lt.s32.totalorder %s44_s6, %s44_s6 }
  0x1a   :  { %p575_p10 = scmp.ne.s32.totalorder %s44_s6, %s574_s1  ;;  %p580_p12 = scmp.lt.s32.totalorder %s574_s1, %s574_s1 }
  0x1c   :  { %p581_p13 = por %p580_p12, %p579_p11 }
  0x1e   :  { %p582_p0 = pnand %p581_p13, %p575_p10 }
  0x20   :  { %585 = shalt.err (!%p582_p0)
}
  0x21   :  { %46 = dma.hbm_to_vmem [thread:$0]  %s700_s2, 512, %s44_s6, [#allocation6]  }
  0x22   :  { %s594_s11 = scalar_lea.vmem %s53_s8, 512  ;;  %p599_p2 = scmp.lt.s32.totalorder %s53_s8, %s53_s8 }
  0x23   :  { %p595_p1 = scmp.ne.s32.totalorder %s53_s8, %s594_s11  ;;  %p600_p3 = scmp.lt.s32.totalorder %s594_s11, %s594_s11 }
  0x25   :  { %p601_p4 = por %p600_p3, %p599_p2 }
  0x27   :  { %p602_p5 = pnand %p601_p4, %p595_p1 }
  0x29   :  { %605 = shalt.err (!%p602_p5)
}
  0x2a   :  { %58 = dma.hbm_to_vmem [thread:$0]  %s701_s3, 512, %s53_s8, [#allocation9], %s614_s23, %s614_s23, %s615_s24  }
  0x2b   :  { %606 = dma.done.wait [#allocation4], 8192  }
  0x2c   :  { %607 = vsyncadd [#allocation4], 4294959104 }
  0x2d   :  { %608 = dma.done.wait [#allocation6], 768  }
  0x2e   :  { %609 = vsyncadd [#allocation6], 4294966528 }
  0x2f   :  { %610 = dma.done.wait [#allocation9], 512  }
  0x30   :  { %611 = vsyncadd [#allocation9], 4294966784  ;;  %v108_v0 = vld [vmem:[#allocation3 + $0xf8] sm:$0xff]  ;;  %v107_v4 = vld [vmem:[#allocation3 + $0xf0] sm:$0xff]  ;;  %vm281_vm0 = vcmask 261120   ;;  %vm619_vm1 = vmmov 0  }
  0x31   :  { %v140_v1 = vld [vmem:[#allocation3 + $0x1f8] sm:$0xff]  ;;  %415 = vmatprep.subr.mxu0 %v108_v0  ;;  %v139_v5 = vld [vmem:[#allocation3 + $0x1f0] sm:$0xff]  ;;  %v106_v8 = vld [vmem:[#allocation3 + $0xe8] sm:$0xff]  ;;  %s620_s13 = smov 96   ;;  %vm390_vm2 = vcmask 257024   ;;  %vm397_vm3 = vcmask 261124  }
  0x32   :  { %v92_v2 = vld [vmem:[#allocation3 + $0x78] sm:$0xff]  ;;  %450 = vmatprep.subr.mxu1 %v140_v1  ;;  %v91_v6 = vld [vmem:[#allocation3 + $0x70] sm:$0xff]  ;;  %v138_v9 = vld [vmem:[#allocation3 + $0x1e8] sm:$0xff] }
  0x33   :  { %v124_v3 = vld [vmem:[#allocation3 + $0x178] sm:$0xff]  ;;  %416 = vmatpush3.msra.mxu0 %v92_v2  ;;  %v123_v7 = vld [vmem:[#allocation3 + $0x170] sm:$0xff]  ;;  %v90_v10 = vld [vmem:[#allocation3 + $0x68] sm:$0xff] }
  0x34   :  { %451 = vmatpush3.msra.mxu1 %v124_v3  ;;  %417 = vmatprep.subr.mxu0 %v107_v4  ;;  %v122_v11 = vld [vmem:[#allocation3 + $0x168] sm:$0xff]  ;;  %v105_v12 = vld [vmem:[#allocation3 + $0xe0] sm:$0xff]  ;;  %v104_v16 = vld [vmem:[#allocation3 + $0xd8] sm:$0xff] }
  0x35   :  { %452 = vmatprep.subr.mxu1 %v139_v5  ;;  %418 = vmatpush3.msra.mxu0 %v91_v6  ;;  %v137_v13 = vld [vmem:[#allocation3 + $0x1e0] sm:$0xff]  ;;  %v136_v17 = vld [vmem:[#allocation3 + $0x1d8] sm:$0xff]  ;;  %v103_v20 = vld [vmem:[#allocation3 + $0xd0] sm:$0xff] }
  0x36   :  { %453 = vmatpush3.msra.mxu1 %v123_v7  ;;  %419 = vmatprep.subr.mxu0 %v106_v8  ;;  %v89_v14 = vld [vmem:[#allocation3 + $0x60] sm:$0xff]  ;;  %v88_v18 = vld [vmem:[#allocation3 + $0x58] sm:$0xff]  ;;  %v135_v21 = vld [vmem:[#allocation3 + $0x1d0] sm:$0xff]  ;;  %v618_v7 = vmov 0.0  }
  0x37   :  { %454 = vmatprep.subr.mxu1 %v138_v9  ;;  %v121_v15 = vld [vmem:[#allocation3 + $0x160] sm:$0xff]  ;;  %420 = vmatpush3.msra.mxu0 %v90_v10  ;;  %v120_v19 = vld [vmem:[#allocation3 + $0x158] sm:$0xff]  ;;  %v87_v22 = vld [vmem:[#allocation3 + $0x50] sm:$0xff] }
  0x38   :  { %455 = vmatpush3.msra.mxu1 %v122_v11  ;;  %421 = vmatprep.subr.mxu0 %v105_v12  ;;  %v119_v23 = vld [vmem:[#allocation3 + $0x150] sm:$0xff]  ;;  %v102_v24 = vld [vmem:[#allocation3 + $0xc8] sm:$0xff]  ;;  %v101_v28 = vld [vmem:[#allocation3 + $0xc0] sm:$0xff] }
  0x39   :  { %456 = vmatprep.subr.mxu1 %v137_v13  ;;  %422 = vmatpush3.msra.mxu0 %v89_v14  ;;  %v134_v25 = vld [vmem:[#allocation3 + $0x1c8] sm:$0xff]  ;;  %v133_v29 = vld [vmem:[#allocation3 + $0x1c0] sm:$0xff]  ;;  %v100_v32 = vld [vmem:[#allocation3 + $0xb8] sm:$0xff] }
  0x3a   :  { %457 = vmatpush3.msra.mxu1 %v121_v15  ;;  %423 = vmatprep.subr.mxu0 %v104_v16  ;;  %v86_v26 = vld [vmem:[#allocation3 + $0x48] sm:$0xff]  ;;  %v85_v30 = vld [vmem:[#allocation3 + $0x40] sm:$0xff]  ;;  %v132_v33 = vld [vmem:[#allocation3 + $0x1b8] sm:$0xff] }
  0x3b   :  { %458 = vmatprep.subr.mxu1 %v136_v17  ;;  %424 = vmatpush3.msra.mxu0 %v88_v18  ;;  %v118_v27 = vld [vmem:[#allocation3 + $0x148] sm:$0xff]  ;;  %v117_v31 = vld [vmem:[#allocation3 + $0x140] sm:$0xff]  ;;  %v84_v34 = vld [vmem:[#allocation3 + $0x38] sm:$0xff] }
  0x3c   :  { %459 = vmatpush3.msra.mxu1 %v120_v19  ;;  %425 = vmatprep.subr.mxu0 %v103_v20  ;;  %v116_v35 = vld [vmem:[#allocation3 + $0x138] sm:$0xff]  ;;  %v99_v36 = vld [vmem:[#allocation3 + $0xb0] sm:$0xff]  ;;  %v98_v40 = vld [vmem:[#allocation3 + $0xa8] sm:$0xff] }
  0x3d   :  { %460 = vmatprep.subr.mxu1 %v135_v21  ;;  %426 = vmatpush3.msra.mxu0 %v87_v22  ;;  %v131_v37 = vld [vmem:[#allocation3 + $0x1b0] sm:$0xff]  ;;  %v130_v41 = vld [vmem:[#allocation3 + $0x1a8] sm:$0xff]  ;;  %v97_v44 = vld [vmem:[#allocation3 + $0xa0] sm:$0xff] }
  0x3e   :  { %461 = vmatpush3.msra.mxu1 %v119_v23  ;;  %427 = vmatprep.subr.mxu0 %v102_v24  ;;  %v83_v38 = vld [vmem:[#allocation3 + $0x30] sm:$0xff]  ;;  %v82_v42 = vld [vmem:[#allocation3 + $0x28] sm:$0xff]  ;;  %v129_v45 = vld [vmem:[#allocation3 + $0x1a0] sm:$0xff] }
  0x3f   :  { %462 = vmatprep.subr.mxu1 %v134_v25  ;;  %428 = vmatpush3.msra.mxu0 %v86_v26  ;;  %v115_v39 = vld [vmem:[#allocation3 + $0x130] sm:$0xff]  ;;  %v114_v43 = vld [vmem:[#allocation3 + $0x128] sm:$0xff]  ;;  %v81_v46 = vld [vmem:[#allocation3 + $0x20] sm:$0xff] }
  0x40   :  { %463 = vmatpush3.msra.mxu1 %v118_v27  ;;  %429 = vmatprep.subr.mxu0 %v101_v28  ;;  %v113_v47 = vld [vmem:[#allocation3 + $0x120] sm:$0xff]  ;;  %v96_v48 = vld [vmem:[#allocation3 + $0x98] sm:$0xff]  ;;  %v95_v52 = vld [vmem:[#allocation3 + $0x90] sm:$0xff] }
  0x41   :  { %464 = vmatprep.subr.mxu1 %v133_v29  ;;  %430 = vmatpush3.msra.mxu0 %v85_v30  ;;  %v128_v49 = vld [vmem:[#allocation3 + $0x198] sm:$0xff]  ;;  %v127_v53 = vld [vmem:[#allocation3 + $0x190] sm:$0xff]  ;;  %v283_v54 = vld [vmem:[#allocation5] sm:$0xff] }
  0x42   :  { %465 = vmatpush3.msra.mxu1 %v117_v31  ;;  %431 = vmatprep.subr.mxu0 %v100_v32  ;;  %v80_v50 = vld [vmem:[#allocation3 + $0x18] sm:$0xff]  ;;  %v284_v55 = vld [vmem:[#allocation5 + $0x8] sm:$0xff]  ;;  %v79_v56 = vld [vmem:[#allocation3 + $0x10] sm:$0xff]  ;;  %285 = vst.msk [vmem:[#allocation2 + $0x8] sm:$0xff] %vm281_vm0, %v283_v54 }
  0x43   :  { %466 = vmatprep.subr.mxu1 %v132_v33  ;;  %432 = vmatpush3.msra.mxu0 %v84_v34  ;;  %v112_v51 = vld [vmem:[#allocation3 + $0x118] sm:$0xff]  ;;  %v111_v57 = vld [vmem:[#allocation3 + $0x110] sm:$0xff]  ;;  %286 = vst.msk [vmem:[#allocation2 + $0x10] sm:$0xff] %vm281_vm0, %v284_v55  ;;  %v94_v58 = vld [vmem:[#allocation3 + $0x88] sm:$0xff] }
  0x44   :  { %467 = vmatpush3.msra.mxu1 %v116_v35  ;;  %433 = vmatprep.subr.mxu0 %v99_v36  ;;  %v126_v59 = vld [vmem:[#allocation3 + $0x188] sm:$0xff]  ;;  %v93_v62 = vld [vmem:[#allocation3 + $0x80] sm:$0xff]  ;;  %v74_v1 = vld [vmem:[#allocation7 + $0x8] sm:$0xff] }
  0x45   :  { %468 = vmatprep.subr.mxu1 %v131_v37  ;;  %434 = vmatpush3.msra.mxu0 %v83_v38  ;;  %v78_v60 = vld [vmem:[#allocation3 + $0x8] sm:$0xff]  ;;  %v125_v63 = vld [vmem:[#allocation3 + $0x180] sm:$0xff]  ;;  %v73_v4 = vld [vmem:[#allocation7] sm:$0xff] }
  0x46   :  { %469 = vmatpush3.msra.mxu1 %v115_v39  ;;  %435 = vmatprep.subr.mxu0 %v98_v40  ;;  %v110_v61 = vld [vmem:[#allocation3 + $0x108] sm:$0xff]  ;;  %v77_v0 = vld [vmem:[#allocation3] sm:$0xff]  ;;  %v291_v9 = vld [vmem:[#allocation8 + $0x8] sm:$0xff] }
  0x47   :  { %470 = vmatprep.subr.mxu1 %v130_v41  ;;  %436 = vmatpush3.msra.mxu0 %v82_v42  ;;  %v109_v2 = vld [vmem:[#allocation3 + $0x100] sm:$0xff]  ;;  %v76_v3 = vld [vmem:[#allocation7 + $0x18] sm:$0xff]  ;;  %v290_v10 = vld [vmem:[#allocation8] sm:$0xff] }
  0x48   :  { %471 = vmatpush3.msra.mxu1 %v114_v43  ;;  %437 = vmatprep.subr.mxu0 %v97_v44  ;;  %v75_v5 = vld [vmem:[#allocation7 + $0x10] sm:$0xff]  ;;  %v293_v6 = vld [vmem:[#allocation8 + $0x18] sm:$0xff] }
  0x49   :  { %472 = vmatprep.subr.mxu1 %v129_v45  ;;  %438 = vmatpush3.msra.mxu0 %v81_v46  ;;  %v292_v8 = vld [vmem:[#allocation8 + $0x10] sm:$0xff]  ;;  %v288_v11 = vld [vmem:[#allocation2 + $0x8] sm:$0xff]  ;;  %v411_v20 = vld [vmem:[%s702_s4] ss:$0 sm:$0xff] }
  0x4a   :  { %473 = vmatpush3.msra.mxu1 %v113_v47  ;;  %439 = vmatprep.subr.mxu0 %v96_v48  ;;  %v289_v12 = vld [vmem:[#allocation2 + $0x10] sm:$0xff] }
  0x4b   :  { %474 = vmatprep.subr.mxu1 %v128_v49  ;;  %440 = vmatpush3.msra.mxu0 %v80_v50 }
  0x4c   :  { %475 = vmatpush3.msra.mxu1 %v112_v51  ;;  %441 = vmatprep.subr.mxu0 %v95_v52 }
  0x4d   :  { %476 = vmatprep.subr.mxu1 %v127_v53  ;;  %442 = vmatpush3.msra.mxu0 %v79_v56 }
  0x4e   :  { %477 = vmatpush3.msra.mxu1 %v111_v57  ;;  %443 = vmatprep.subr.mxu0 %v94_v58 }
  0x4f   :  { %478 = vmatprep.subr.mxu1 %v126_v59  ;;  %444 = vmatpush3.msra.mxu0 %v78_v60 }
  0x50   :  { %479 = vmatpush3.msra.mxu1 %v110_v61  ;;  %445 = vmatprep.subr.mxu0 %v93_v62 }
  0x51   :  { %480 = vmatprep.subr.mxu1 %v125_v63  ;;  %446 = vmatpush3.msra.mxu0 %v77_v0 }
  0x52   :  { %205 = vmatprep.mubr.f32.mxu0 %v74_v1  ;;  %481 = vmatpush3.msra.mxu1 %v109_v2 }
  0x53   :  { %275 = vmatprep.mubr.f32.mxu1 %v76_v3  ;;  %206 = vmatmul.mubr.f32.vlgmr.msra.gmra.mxu0 %v73_v4 }
  0x54   :  { %276 = vmatmul.mubr.f32.vlgmr.msra.gmra.mxu1 %v75_v5  ;;  %509 = vmatprep.subr.mxu1 %v618_v7 }
  0x55   :  { %503 = vmatprep.mubr.msk.f32.mxu1 %vm619_vm1, %v618_v7  ;;  %513 = vmatpush3.msra.mxu1 %v293_v6 }
  0x56   :  { %492 = vmatprep.subr.mxu0 %v618_v7  ;;  %510 = vmatprep.subr.mxu1 %v618_v7 }
  0x57   :  { %493 = vmatpush3.msra.mxu0 %v293_v6  ;;  %514 = vmatpush3.msra.mxu1 %v292_v8 }
  0x58   :  { %494 = vmatprep.subr.mxu0 %v618_v7  ;;  %511 = vmatprep.subr.mxu1 %v618_v7 }
  0x59   :  { %495 = vmatpush3.msra.mxu0 %v292_v8  ;;  %515 = vmatpush3.msra.mxu1 %v291_v9 }
  0x5a   :  { %496 = vmatprep.subr.mxu0 %v618_v7  ;;  %512 = vmatprep.subr.mxu1 %v618_v7 }
  0x5b   :  { %497 = vmatpush3.msra.mxu0 %v291_v9  ;;  %516 = vmatpush3.msra.mxu1 %v290_v10 }
  0x5c   :  { %498 = vmatprep.subr.mxu0 %v618_v7  ;;  %504 = vmatmul.mubr.msk.f32.vlgmr.msra.gmra.mxu1 %vm281_vm0, %v288_v11 }
  0x5d   :  { %499 = vmatpush3.msra.mxu0 %v290_v10  ;;  %506 = vmatprep.mubr.msk.f32.mxu1 %vm619_vm1, %v618_v7 }
  0x5e   :  { %500 = vmatprep.mubr.msk.f32.mxu0 %vm619_vm1, %v618_v7 }
  0x60   :  { %507 = vmatmul.mubr.msk.f32.gmra.mxu1 %vm281_vm0, %v289_v12 }
 0x113   :  { %v447_v13 = vpop.f32.mrf.mxu0 }
 0x114   :  { %v482_v14 = vpop.f32.mrf.mxu1 }
 0x115   :  { %v448_v15 = vpop.f32.mrf.mxu0 }
 0x116   :  { %v483_v16 = vpop.f32.mrf.mxu1  ;;  %v449_v17 = vadd.f32 %v448_v15, %v447_v13 }
 0x117   :  { %v484_v18 = vadd.f32 %v483_v16, %v482_v14 }
 0x119   :  { %v278_v19 = vadd.f32 %v484_v18, %v449_v17 }
 0x11b   :  { %282 = vst.msk [vmem:[#allocation2] sm:$0xff] %vm281_vm0, %v278_v19 }
 0x11c   :  { %v381_v21 = vpop.f32.mrf.mxu1 }
 0x11d   :  { %v382_v22 = vadd.f32 %v411_v20, %v381_v21 }
 0x11e   :  { %v505_v23 = vpop.f32.mrf.mxu1 }
 0x11f   :  { %393 = vrot.lane.b32.xlu0 %v382_v22, %s620_s13 }
 0x120   :  { %v386_v24 = vpop.f32.mrf.mxu1 }
 0x121   :  { %v387_v26 = vadd.f32 %v411_v20, %v386_v24 }
 0x122   :  { %v287_v25 = vld [vmem:[#allocation2] sm:$0xff]  ;;  %v508_v27 = vpop.f32.mrf.mxu1 }
 0x123   :  { %501 = vmatmul.mubr.msk.f32.vlgmr.msra.gmra.mxu0 %vm281_vm0, %v287_v25  ;;  %400 = vrot.lane.b32.xlu0 %v387_v26, %s620_s13 }
 0x191   :  { %v394_v28 = vpop.permute.xlu0 %393 }
 0x192   :  { %396 = vst.msk [vmem:[%s703_s5 + $0x4] sm:$0xff] %vm281_vm0, %v394_v28 }
 0x195   :  { %v401_v29 = vpop.permute.xlu0 %400 }
 0x196   :  { %403 = vst.msk [vmem:[%s703_s5 + $0x10] sm:$0xff] %vm281_vm0, %v401_v29 }
 0x1e3   :  { %v376_v30 = vpop.f32.mrf.mxu0 }
 0x1e4   :  { %v377_v31 = vadd.f32 %v411_v20, %v376_v30 }
 0x1e5   :  { %v502_v32 = vpop.f32.mrf.mxu0 }
 0x1e6   :  { %391 = vst.msk [vmem:[%s703_s5] sm:$0xf] %vm390_vm2, %v377_v31 }
 0x1e7   :  { %398 = vst.msk [vmem:[%s703_s5 + $0x8] sm:$0xf0] %vm397_vm3, %v377_v31 }
 0x1e8   :  { %408 = vsyncpa [#allocation4], 1 }
 0x1e9   :  { %409 = vsyncpa [#allocation6], 1 }
 0x1ea   :  { %410 = vsyncpa [#allocation9], 1 }

</bundles_post_ra>
